<compile_context>
chip_gen: v5e
topology: v5e:2x2
jax: 0.10.0
libtpu: 0.0.40
codegen_flags: <defaults>
</compile_context>

<pallas_src>
import functools

import jax
import jax.numpy as jnp
from jax.experimental import pallas as pl
from jax.experimental.pallas import tpu as pltpu


def _round_up(x, m):
    return (x + m - 1) // m * m


# Safe on every generation: well under v7x's 64 MiB physical VMEM, above the
# 16/32 MiB scoped defaults on v5e/v6e so large M tiles still pipeline deeply.
_VMEM_LIMIT_BYTES = 48 * 1024 * 1024


def _conv_stats_kernel(w_ref, p_ref, y_ref, psum_ref, psq_ref, *, m_real, block_m):
    """One M-tile: conv matmul + per-channel BN partial statistics.

    w_ref:    (Cp, Kp)  bf16  resident reshaped weights
    p_ref:    (Kp, TM)  bf16  im2col^T tile (K on sublanes, M on lanes)
    y_ref:    (Cp, TM)  f32   pre-BN conv output tile
    psum_ref: (Cp, 128) f32   this tile's per-channel sum   (lane-broadcast)
    psq_ref:  (Cp, 128) f32   this tile's per-channel sum of squares
    """
    y = jnp.dot(w_ref[...], p_ref[...], preferred_element_type=jnp.float32)
    y_ref[...] = y

    # Per-tile mask of padded M columns (only the last tile can have them).
    i = pl.program_id(0)
    col = jax.lax.broadcasted_iota(jnp.int32, y.shape, 1)
    valid = col < (m_real - i * block_m)
    ym = jnp.where(valid, y, 0.0)

    s = jnp.sum(ym, axis=1, keepdims=True)        # (Cp, 1)
    sq = jnp.sum(ym * ym, axis=1, keepdims=True)  # (Cp, 1)
    psum_ref[...] = jnp.broadcast_to(s, psum_ref.shape)
    psq_ref[...] = jnp.broadcast_to(sq, psq_ref.shape)


def _bn_lrelu_kernel(y_ref, scale_ref, shift_ref, o_ref, *, neg_slope):
    """Per-tile BN normalize (folded to one scale/shift per channel) + LeakyReLU."""
    yn = y_ref[...] * scale_ref[...] + shift_ref[...]
    o_ref[...] = jnp.where(yn >= 0.0, yn, neg_slope * yn)


@functools.partial(
    jax.jit,
    static_argnames=("padding", "stride", "block_m", "eps", "neg_slope"))
def conv_block_forward(x, weight, bias, gamma, beta, *, padding, stride,
                       block_m=2048, eps=1e-5, neg_slope=0.2):
    """x: (N, Cin, H, W) f32; weight: (Cout, Cin, KH, KW); bias/gamma/beta: (Cout,)."""
    N, Cin, H, W = x.shape
    Cout, _, KH, KW = weight.shape
    assert padding < H and padding < W, "reflect padding must be < spatial dims"
    assert block_m % 128 == 0, "block_m must be a multiple of 128 (lane tile)"

    # Reflect padding (PyTorch padding_mode='reflect').
    if padding > 0:
        x = jnp.pad(x, ((0, 0), (0, 0), (padding, padding), (padding, padding)),
                    mode="reflect")
    Hp, Wp = x.shape[2], x.shape[3]
    OH = (Hp - KH) // stride + 1
    OW = (Wp - KW) // stride + 1
    M = N * OH * OW
    K = Cin * KH * KW

    # im2col^T: (K, M), K flattened in (Cin, KH, KW) order to match the weight
    # reshape below.  Fused under jit with the reflect pad.
    cols = []
    for kh in range(KH):
        for kw in range(KW):
            cols.append(x[:, :, kh:kh + stride * OH:stride, kw:kw + stride * OW:stride])
    pt = jnp.stack(cols, axis=0)          # (KH*KW, N, Cin, OH, OW)
    pt = pt.transpose(2, 0, 1, 3, 4)      # (Cin, KH*KW, N, OH, OW)
    pt = pt.reshape(K, M)

    w2d = weight.reshape(Cout, K)         # (Cout, K), K in (Cin, KH, KW) order

    # Tiling: M padded to the lane tile only, Cout to 8 sublanes only, K to the
    # bf16 sublane-packing multiple of 16 (NOT 128).
    TM = block_m
    Kp = _round_up(K, 16)
    Cp = _round_up(Cout, 8)
    Mp = _round_up(M, TM)
    G = Mp // TM

    pt_pad = jnp.zeros((Kp, Mp), jnp.bfloat16).at[:K, :M].set(pt.astype(jnp.bfloat16))
    w_pad = jnp.zeros((Cp, Kp), jnp.bfloat16).at[:Cout, :K].set(w2d.astype(jnp.bfloat16))

    # Conv bias is exactly cancelled by the training-mode BatchNorm mean
    # subtraction, so it is intentionally not applied (saves a VPU pass + DMA).
    del bias

    cost1 = pl.CostEstimate(
        flops=2 * Mp * Kp * Cp + 4 * Mp * Cp,
        transcendentals=0,
        bytes_accessed=(pt_pad.size * 2 + w_pad.size * 2
                        + Cp * Mp * 4 + 2 * G * Cp * 128 * 4))

    # Pass 1: tiled conv matmul + per-tile BN partial sums.  Every grid step
    # writes distinct output blocks, so the M axis is "parallel" (2 TCs on v7x).
    y, psum, psq = pl.pallas_call(
        functools.partial(_conv_stats_kernel, m_real=M, block_m=TM),
        out_shape=(jax.ShapeDtypeStruct((Cp, Mp), jnp.float32),
                   jax.ShapeDtypeStruct((G * Cp, 128), jnp.float32),
                   jax.ShapeDtypeStruct((G * Cp, 128), jnp.float32)),
        grid=(G,),
        in_specs=[pl.BlockSpec((Cp, Kp), lambda i: (0, 0)),   # weights resident
                  pl.BlockSpec((Kp, TM), lambda i: (0, i))],  # im2col^T tile
        out_specs=(pl.BlockSpec((Cp, TM), lambda i: (0, i)),
                   pl.BlockSpec((Cp, 128), lambda i: (i, 0)),
                   pl.BlockSpec((Cp, 128), lambda i: (i, 0))),
        compiler_params=pltpu.CompilerParams(
            dimension_semantics=("parallel",),
            vmem_limit_bytes=_VMEM_LIMIT_BYTES),
        cost_estimate=cost1,
    )(w_pad, pt_pad)

    # Finish BN statistics on tiny (Cout,) vectors in plain JAX and fold
    # gamma/beta/mean/var into a single per-channel scale & shift.
    sum_c = psum.reshape(G, Cp, 128)[:, :Cout, 0].sum(axis=0)
    sq_c = psq.reshape(G, Cp, 128)[:, :Cout, 0].sum(axis=0)
    mean = sum_c / M
    var = jnp.maximum(sq_c / M - mean * mean, 0.0)   # biased variance (training BN)
    scale = gamma * jax.lax.rsqrt(var + eps)
    shift = beta - mean * scale
    scale_pad = jnp.zeros((Cp, 1), jnp.float32).at[:Cout, 0].set(scale)
    shift_pad = jnp.zeros((Cp, 1), jnp.float32).at[:Cout, 0].set(shift)

    cost2 = pl.CostEstimate(flops=4 * Mp * Cp, transcendentals=0,
                            bytes_accessed=2 * Cp * Mp * 4)

    # Pass 2: tiled normalize + LeakyReLU, lane-dense (Cout, M) output.
    out = pl.pallas_call(
        functools.partial(_bn_lrelu_kernel, neg_slope=neg_slope),
        out_shape=jax.ShapeDtypeStruct((Cp, Mp), jnp.float32),
        grid=(G,),
        in_specs=[pl.BlockSpec((Cp, TM), lambda i: (0, i)),
                  pl.BlockSpec((Cp, 1), lambda i: (0, 0)),
                  pl.BlockSpec((Cp, 1), lambda i: (0, 0))],
        out_specs=pl.BlockSpec((Cp, TM), lambda i: (0, i)),
        compiler_params=pltpu.CompilerParams(
            dimension_semantics=("parallel",),
            vmem_limit_bytes=_VMEM_LIMIT_BYTES),
        cost_estimate=cost2,
    )(y, scale_pad, shift_pad)

    # (Cout, M) -> (Cout, N, OH, OW) -> NCHW.
    return out[:Cout, :M].reshape(Cout, N, OH, OW).transpose(1, 0, 2, 3)


def _reference(x, weight, bias, gamma, beta, *, padding, stride,
               eps=1e-5, neg_slope=0.2):
    """Pure-JAX reference (conv + training-mode BN + LeakyReLU), matched to the
    kernel's bf16-input / f32-accumulation matmul numerics."""
    xp = jnp.pad(x, ((0, 0), (0, 0), (padding, padding), (padding, padding)),
                 mode="reflect") if padding > 0 else x
    y = jax.lax.conv_general_dilated(
        xp.astype(jnp.bfloat16), weight.astype(jnp.bfloat16),
        window_strides=(stride, stride), padding="VALID",
        dimension_numbers=("NCHW", "OIHW", "NCHW"),
        preferred_element_type=jnp.float32)
    y = y + bias[None, :, None, None]     # present in the module; cancels in BN
    mean = jnp.mean(y, axis=(0, 2, 3), keepdims=True)
    var = jnp.mean((y - mean) ** 2, axis=(0, 2, 3), keepdims=True)
    yn = (y - mean) * jax.lax.rsqrt(var + eps)
    yn = yn * gamma[None, :, None, None] + beta[None, :, None, None]
    return jnp.where(yn >= 0.0, yn, neg_slope * yn)


if __name__ == "__main__":
    key = jax.random.PRNGKey(0)
    k1, k2, k3, k4, k5 = jax.random.split(key, 5)

    N, Cin, H, W = 2, 4, 16, 16
    Cout, KH, KW = 8, 3, 3
    padding, stride = 1, 1

    x = jax.random.normal(k1, (N, Cin, H, W), jnp.float32)
    weight = jax.random.normal(k2, (Cout, Cin, KH, KW), jnp.float32) * 0.1
    bias = jax.random.normal(k3, (Cout,), jnp.float32) * 0.1
    gamma = 1.0 + 0.1 * jax.random.normal(k4, (Cout,), jnp.float32)
    beta = 0.1 * jax.random.normal(k5, (Cout,), jnp.float32)

    # block_m=128 so the small test exercises a multi-step grid (M=512 -> 4 tiles);
    # real workloads use the larger default sized for v7x's 64 MiB VMEM.
    out = conv_block_forward(x, weight, bias, gamma, beta,
                             padding=padding, stride=stride, block_m=128)
    out = jax.block_until_ready(out)

    ref = _reference(x, weight, bias, gamma, beta, padding=padding, stride=stride)
    assert out.shape == (N, Cout, H, W)
    err = float(jnp.max(jnp.abs(out - ref)))
    assert err < 2e-3, f"max abs err {err}"

    print("KERNEL_OK")
</pallas_src>

<mosaic_0001>
module attributes {stable_mosaic.version = 11 : i64} {
  func.func @_bn_lrelu_kernel(%arg0: i32, %arg1: memref<8x128xf32, #tpu.memory_space<vmem>>, %arg2: memref<8x1xf32, #tpu.memory_space<vmem>>, %arg3: memref<8x1xf32, #tpu.memory_space<vmem>>, %arg4: memref<8x128xf32, #tpu.memory_space<vmem>>) attributes {dimension_semantics = [#tpu.dimension_semantics<parallel>], iteration_bounds = array<i64: 4>, scalar_prefetch = 0 : i64, scratch_operands = 0 : i64, tpu.core_type = #tpu.core_type<tc>, window_params = [{transform_indices = @transform_0, window_bounds = array<i64: 8, 128>}, {pipeline_mode = #tpu.pipeline_mode<synchronous>, transform_indices = @transform_1, window_bounds = array<i64: 8, 1>}, {pipeline_mode = #tpu.pipeline_mode<synchronous>, transform_indices = @transform_2, window_bounds = array<i64: 8, 1>}, {transform_indices = @transform_3, window_bounds = array<i64: 8, 128>}]} {
    %c0 = arith.constant 0 : index
    %c0_0 = arith.constant 0 : index
    %0 = vector.load %arg1[%c0, %c0_0] : memref<8x128xf32, #tpu.memory_space<vmem>>, vector<8x128xf32>
    %c0_1 = arith.constant 0 : index
    %c0_2 = arith.constant 0 : index
    %1 = vector.load %arg2[%c0_1, %c0_2] : memref<8x1xf32, #tpu.memory_space<vmem>>, vector<8x1xf32>
    %2 = vector.broadcast %1 : vector<8x1xf32> to vector<8x128xf32>
    %3 = arith.mulf %0, %2 : vector<8x128xf32>
    %c0_3 = arith.constant 0 : index
    %c0_4 = arith.constant 0 : index
    %4 = vector.load %arg3[%c0_3, %c0_4] : memref<8x1xf32, #tpu.memory_space<vmem>>, vector<8x1xf32>
    %5 = vector.broadcast %4 : vector<8x1xf32> to vector<8x128xf32>
    %6 = arith.addf %3, %5 : vector<8x128xf32>
    %cst = arith.constant 0.000000e+00 : f32
    %7 = vector.broadcast %cst : f32 to vector<8x128xf32>
    %8 = arith.cmpf oge, %6, %7 : vector<8x128xf32>
    %cst_5 = arith.constant 2.000000e-01 : f32
    %9 = vector.broadcast %cst_5 : f32 to vector<8x128xf32>
    %10 = arith.mulf %9, %6 : vector<8x128xf32>
    %11 = arith.select %8, %6, %10 : vector<8x128xi1>, vector<8x128xf32>
    %c0_6 = arith.constant 0 : index
    %c0_7 = arith.constant 0 : index
    %12 = vector.load %arg4[%c0_6, %c0_7] : memref<8x128xf32, #tpu.memory_space<vmem>>, vector<8x128xf32>
    tpu.vector_store %arg4[%c0_6, %c0_7], %11 {strides = array<i32>} : memref<8x128xf32, #tpu.memory_space<vmem>>, vector<8x128xf32>,
    return
  }
  func.func @transform_0(%arg0: i32) -> (i32, i32) {
    %c0_i32 = arith.constant 0 : i32
    %c0_i32_0 = arith.constant 0 : i32
    return %c0_i32, %arg0 : i32, i32
  }
  func.func @transform_1(%arg0: i32) -> (i32, i32) {
    %c0_i32 = arith.constant 0 : i32
    %c0_i32_0 = arith.constant 0 : i32
    %c0_i32_1 = arith.constant 0 : i32
    return %c0_i32, %c0_i32_0 : i32, i32
  }
  func.func @transform_2(%arg0: i32) -> (i32, i32) {
    %c0_i32 = arith.constant 0 : i32
    %c0_i32_0 = arith.constant 0 : i32
    %c0_i32_1 = arith.constant 0 : i32
    return %c0_i32, %c0_i32_0 : i32, i32
  }
  func.func @transform_3(%arg0: i32) -> (i32, i32) {
    %c0_i32 = arith.constant 0 : i32
    %c0_i32_0 = arith.constant 0 : i32
    return %c0_i32, %arg0 : i32, i32
  }
}

module attributes {stable_mosaic.version = 11 : i64} {
  func.func @_conv_stats_kernel(%arg0: i32, %arg1: memref<8x48xbf16, #tpu.memory_space<vmem>>, %arg2: memref<48x128xbf16, #tpu.memory_space<vmem>>, %arg3: memref<8x128xf32, #tpu.memory_space<vmem>>, %arg4: memref<8x128xf32, #tpu.memory_space<vmem>>, %arg5: memref<8x128xf32, #tpu.memory_space<vmem>>) attributes {dimension_semantics = [#tpu.dimension_semantics<parallel>], iteration_bounds = array<i64: 4>, scalar_prefetch = 0 : i64, scratch_operands = 0 : i64, tpu.core_type = #tpu.core_type<tc>, window_params = [{pipeline_mode = #tpu.pipeline_mode<synchronous>, transform_indices = @transform_0, window_bounds = array<i64: 8, 48>}, {transform_indices = @transform_1, window_bounds = array<i64: 48, 128>}, {transform_indices = @transform_2, window_bounds = array<i64: 8, 128>}, {transform_indices = @transform_3, window_bounds = array<i64: 8, 128>}, {transform_indices = @transform_4, window_bounds = array<i64: 8, 128>}]} {
    %c0 = arith.constant 0 : index
    %c0_0 = arith.constant 0 : index
    %0 = vector.load %arg1[%c0, %c0_0] : memref<8x48xbf16, #tpu.memory_space<vmem>>, vector<8x48xbf16>
    %c0_1 = arith.constant 0 : index
    %c0_2 = arith.constant 0 : index
    %1 = vector.load %arg2[%c0_1, %c0_2] : memref<48x128xbf16, #tpu.memory_space<vmem>>, vector<48x128xbf16>
    %cst = arith.constant dense<0.000000e+00> : vector<8x128xf32>
    %2 = tpu.matmul %0, %1, %cst {dimension_numbers = #tpu.dot_dimension_numbers<[1], [0], [0], [1], [0, 0, 1, 1], [], []>} : vector<8x48xbf16>, vector<48x128xbf16>, vector<8x128xf32> -> vector<8x128xf32>
    %c0_3 = arith.constant 0 : index
    %c0_4 = arith.constant 0 : index
    %3 = vector.load %arg3[%c0_3, %c0_4] : memref<8x128xf32, #tpu.memory_space<vmem>>, vector<8x128xf32>
    tpu.vector_store %arg3[%c0_3, %c0_4], %2 {strides = array<i32>} : memref<8x128xf32, #tpu.memory_space<vmem>>, vector<8x128xf32>,
    %4 = tpu.iota {dimensions = array<i32: 1>} : vector<8x128xi32>
    %c128_i32 = arith.constant 128 : i32
    %5 = arith.muli %arg0, %c128_i32 : i32
    %c512_i32 = arith.constant 512 : i32
    %6 = arith.subi %c512_i32, %5 : i32
    %7 = vector.broadcast %6 : i32 to vector<8x128xi32>
    %8 = arith.cmpi slt, %4, %7 : vector<8x128xi32>
    %cst_5 = arith.constant 0.000000e+00 : f32
    %9 = vector.broadcast %cst_5 : f32 to vector<8x128xf32>
    %10 = arith.select %8, %2, %9 : vector<8x128xi1>, vector<8x128xf32>
    %cst_6 = arith.constant dense<0.000000e+00> : vector<8xf32>
    %11 = vector.multi_reduction <add>, %10, %cst_6 [1] : vector<8x128xf32> to vector<8xf32>
    %12 = vector.shape_cast %11 : vector<8xf32> to vector<8x1xf32>
    %13 = arith.mulf %10, %10 : vector<8x128xf32>
    %cst_7 = arith.constant dense<0.000000e+00> : vector<8xf32>
    %14 = vector.multi_reduction <add>, %13, %cst_7 [1] : vector<8x128xf32> to vector<8xf32>
    %15 = vector.shape_cast %14 : vector<8xf32> to vector<8x1xf32>
    %16 = vector.shape_cast %12 : vector<8x1xf32> to vector<8x1xf32>
    %17 = vector.broadcast %16 : vector<8x1xf32> to vector<8x128xf32>
    %c0_8 = arith.constant 0 : index
    %c0_9 = arith.constant 0 : index
    %18 = vector.load %arg4[%c0_8, %c0_9] : memref<8x128xf32, #tpu.memory_space<vmem>>, vector<8x128xf32>
    tpu.vector_store %arg4[%c0_8, %c0_9], %17 {strides = array<i32>} : memref<8x128xf32, #tpu.memory_space<vmem>>, vector<8x128xf32>,
    %19 = vector.shape_cast %15 : vector<8x1xf32> to vector<8x1xf32>
    %20 = vector.broadcast %19 : vector<8x1xf32> to vector<8x128xf32>
    %c0_10 = arith.constant 0 : index
    %c0_11 = arith.constant 0 : index
    %21 = vector.load %arg5[%c0_10, %c0_11] : memref<8x128xf32, #tpu.memory_space<vmem>>, vector<8x128xf32>
    tpu.vector_store %arg5[%c0_10, %c0_11], %20 {strides = array<i32>} : memref<8x128xf32, #tpu.memory_space<vmem>>, vector<8x128xf32>,
    return
  }
  func.func @transform_0(%arg0: i32) -> (i32, i32) {
    %c0_i32 = arith.constant 0 : i32
    %c0_i32_0 = arith.constant 0 : i32
    %c0_i32_1 = arith.constant 0 : i32
    return %c0_i32, %c0_i32_0 : i32, i32
  }
  func.func @transform_1(%arg0: i32) -> (i32, i32) {
    %c0_i32 = arith.constant 0 : i32
    %c0_i32_0 = arith.constant 0 : i32
    return %c0_i32, %arg0 : i32, i32
  }
  func.func @transform_2(%arg0: i32) -> (i32, i32) {
    %c0_i32 = arith.constant 0 : i32
    %c0_i32_0 = arith.constant 0 : i32
    return %c0_i32, %arg0 : i32, i32
  }
  func.func @transform_3(%arg0: i32) -> (i32, i32) {
    %c0_i32 = arith.constant 0 : i32
    %c0_i32_0 = arith.constant 0 : i32
    return %arg0, %c0_i32 : i32, i32
  }
  func.func @transform_4(%arg0: i32) -> (i32, i32) {
    %c0_i32 = arith.constant 0 : i32
    %c0_i32_0 = arith.constant 0 : i32
    return %arg0, %c0_i32 : i32, i32
  }
}

</mosaic_0001>

<bundles_post_ra>
// kernel: conv_block_forward.3
= control target key start
LH: loop header
LB: loop body
LE: loop exit
PB: predicated region body
PF: predicated region fallthrough
CT: control target
= control target key end

     0   :  { %s286_s12 = smov 0   ;;  %s309_s0 = inlined_call_operand.vmem [shape: f32[8,512], index: 0, kind: input, shape index: {}]   ;;  %s310_s1 = inlined_call_operand.vmem [shape: f32[8,1], index: 1, kind: input, shape index: {}]   ;;  %s311_s2 = inlined_call_operand.vmem [shape: f32[8,1], index: 2, kind: input, shape index: {}]   ;;  %s312_s3 = inlined_call_operand.vmem [shape: f32[8,512], index: 3, kind: output, shape index: {}]  }
   0x1 LB: > { %s238_s13 = sadd.s32 4294967295, %s263_s12   ;;  %p242_p0 = scmp.ge.s32.totalorder %s263_s12, 1  ;;  %s263_s12 = sphi %s286_s12, %s13_s12  }
   0x2   : > { %p136_p1 = scmp.lt.s32.totalorder %s263_s12, 5 }
   0x4   : > { %p137_p2 = pnand %p242_p0, %p136_p1 }
   0x5   : > { %p158_p3 = scmp.lt.s32.totalorder (!%p137_p2), %s238_s13, 3 }
   0x6   : > { %140 = sbr.rel (%p137_p2) target bundleno = 142 (0x8e), region = 32 }
   0xb   : > { %v167_v0 = vld [vmem:[%s310_s1] sm:$0xff]  ;;  %v265_v1 = vmov 0   ;;  %s314_s13 = smov (!%p158_p3, %s238_s13), 3 }
   0xc   : > { %256 = vset.pattern.permute.xlu0 %v265_v1  ;;  %v174_v2 = vld [vmem:[%s311_s2] sm:$0xff]  ;;  %s243_s18 = sshll.u32 %s314_s13, 3 }
   0xd   : > { %170 = vperm.xlu0 %256, %v167_v0   ;;  %s161_s21 = scalar_lea.vmem %s309_s0, %s243_s18  ;;  %s165_s24 = scalar_lea.vmem %s312_s3, %s243_s18 }
   0xe   : > { %v166_v4 = vld [vmem:[%s161_s21] sm:$0xff] }
  0x15   : > { %177 = vperm.xlu0 %256, %v174_v2  }
  0x7f   : > { %v171_v3 = vpop.permute.xlu0 %170 }
  0x80   : > { %v173_v5 = vmul.f32 %v171_v3, %v166_v4 }
  0x87   : > { %v178_v6 = vpop.permute.xlu0 %177 }
  0x88   : > { %v180_v7 = vadd.f32 %v178_v6, %v173_v5 }
  0x8a   : > { %vm181_vm0 = vcmp.ge.f32.partialorder %v180_v7, 0.0  ;;  %v182_v8 = vmul.f32 0.2, %v180_v7 }
  0x8c   : > { %v183_v9 = vsel %vm181_vm0, %v180_v7, %v182_v8 }
  0x8d   : > { %184 = vst [vmem:[%s165_s24] sm:$0xff] %v183_v9 }
  0x8e PF: > { %s13_s12 = sadd.s32 1, %s263_s12  }
  0x8f   : > { %p10_p4 = scmp.ge.s32.totalorder %s13_s12, 6  }
  0x91   :  { %12 = sbr.rel (!%p10_p4) target bundleno = 1 (0x1), region = 62 }

// kernel: conv_block_forward.2
= control target key start
LH: loop header
LB: loop body
LE: loop exit
PB: predicated region body
PF: predicated region fallthrough
CT: control target
= control target key end

     0   :  { %s562_s15 = smov 0   ;;  %s564_s16 = smov 0   ;;  %s626_s0 = inlined_call_operand.vmem [shape: bf16[8,48], index: 0, kind: input, shape index: {}]   ;;  %s627_s1 = inlined_call_operand.vmem [shape: bf16[48,512], index: 1, kind: input, shape index: {}]   ;;  %s628_s2 = inlined_call_operand.vmem [shape: f32[8,512], index: 2, kind: output, shape index: {0}]   ;;  %s629_s3 = inlined_call_operand.vmem [shape: f32[32,128], index: 3, kind: output, shape index: {1}]   ;;  %s630_s4 = inlined_call_operand.vmem [shape: f32[32,128], index: 4, kind: output, shape index: {2}]  }
   0x1   :  { %s566_s17 = smov 0  }
   0x2 LB: > { %s578_s18 = sadd.s32 4294967295, %s535_s17   ;;  %s581_s19 = sadd.s32 1, %s535_s17   ;;  %s535_s17 = sphi %s566_s17, %s633_s17   ;;  %s531_s16 = sphi %s564_s16, %s632_s16   ;;  %s527_s15 = sphi %s562_s15, %s631_s15  }
   0x3   : > { %s40_s20 = ssub.s32 %s535_s17, %s581_s19  ;;  %s43_s21 = sadd.s32 1, %s531_s16 }
   0x4   : > { %p41_p0 = scmp.eq.s32.totalorder %s40_s20, 0  ;;  %p50_p1 = scmp.ne.s32.totalorder %s531_s16, %s527_s15 }
   0x5   : > { %p51_p2 = scmp.eq.s32.totalorder %s535_s17, 0  ;;  %p462_p4 = scmp.ge.s32.totalorder %s535_s17, 4 }
   0x6   : > { %s590_s22 = scalar_select %p41_p0, %s531_s16, %s43_s21  }
   0x7   : > { %p52_p3 = por %p51_p2, %p50_p1  ;;  %157 = sbr.rel (%p462_p4) target bundleno = 22 (0x16), region = 20 }
   0xc   : > { %160 = sbr.rel (!%p52_p3) target bundleno = 22 (0x16), region = 24  ;;  %s162_s23 = sand.u32 (%p52_p3), 1, %s531_s16  }
   0xd   : > { %s463_s24 = sshll.u32 (%p52_p3), %s535_s17, 2  ;;  %s487_s25 = smul.u32 (%p52_p3), 24, %s162_s23 }
   0xe   : > { %s166_s28 = scalar_lea.vmem (%p52_p3), %s627_s1, %s463_s24 }
   0xf   : > { %v183_v0 = vld [vmem:[%s166_s28] sm:$0xf] (%p52_p3)  ;;  %v185_v1 = vld [vmem:[%s166_s28 + $0x10] sm:$0xf] (%p52_p3)  ;;  %s164_s29 = scalar_lea.vmem (%p52_p3), [#allocation2], %s487_s25 }
  0x10   : > { %v187_v2 = vld [vmem:[%s166_s28 + $0x20] sm:$0xf] (%p52_p3)  ;;  %184 = vst [vmem:[%s164_s29] sm:$0xf] (%p52_p3), %v183_v0  ;;  %v189_v3 = vld [vmem:[%s166_s28 + $0x30] sm:$0xf] (%p52_p3) }
  0x11   : > { %186 = vst [vmem:[%s164_s29 + $0x4] sm:$0xf] %v185_v1  ;;  %v191_v4 = vld [vmem:[%s166_s28 + $0x40] sm:$0xf]  ;;  %v193_v5 = vld [vmem:[%s166_s28 + $0x50] sm:$0xf] }
  0x12   : > { %188 = vst [vmem:[%s164_s29 + $0x8] sm:$0xf] %v187_v2 }
  0x13   : > { %190 = vst [vmem:[%s164_s29 + $0xc] sm:$0xf] %v189_v3 }
  0x14   : > { %192 = vst [vmem:[%s164_s29 + $0x10] sm:$0xf] %v191_v4 }
  0x15   : > { %194 = vst [vmem:[%s164_s29 + $0x14] sm:$0xf] %v193_v5 }
  0x16 PF: > { %p464_p5 = scmp.ge.s32.totalorder %s535_s17, 1  ;;  %p229_p6 = scmp.lt.s32.totalorder %s535_s17, 5 }
  0x18   : > { %p230_p7 = pnand %p464_p5, %p229_p6 }
  0x19   : > { %s236_s30 = sand.u32 (!%p230_p7), 1, %s527_s15   ;;  %p268_p8 = scmp.lt.s32.totalorder (!%p230_p7), %s578_s18, 3 }
  0x1a   : > { %233 = sbr.rel (%p230_p7) target bundleno = 295 (0x127), region = 65  ;;  %s481_s9 = sshll.u32 (!%p230_p7), %s578_s18, 7 }
  0x1b   : > { %s488_s5 = smul.u32 (!%p230_p7), 24, %s236_s30  ;;  %s327_s10 = ssub.s32 (!%p230_p7), 512, %s481_s9 }
  0x1d   : > { %s238_s6 = scalar_lea.vmem (!%p230_p7), [#allocation2], %s488_s5 }
  0x1f   : > { %v486_v6 = vld [vmem:[%s238_s6 + $0x10] sm:$0xff]  ;;  %v485_v7 = vld [vmem:[%s238_s6 + $0x8] sm:$0xff]  ;;  %v484_v8 = vld [vmem:[%s238_s6] sm:$0xff]  ;;  %vm306_vm0 = vcmask 392192   ;;  %v324_v10 = vlaneseq  ;;  %s635_s18 = smov (!%p268_p8, %s578_s18), 3  ;;  %v328_v12 = vstv %s327_s10 }
  0x20   : > { %315 = vmatpush.bf16.msra.mxu0 %v486_v6  ;;  %v281_v9 = vld [vmem:[%s626_s0] sm:$0xf]  ;;  %s465_s11 = sshll.u32 %s635_s18, 3 }
  0x21   : > { %v325_v11 = vand.u32 127, %v324_v10  ;;  %s271_s14 = scalar_lea.vmem %s628_s2, %s465_s11  ;;  %s275_s20 = scalar_lea.vmem %s629_s3, %s465_s11 }
  0x22   : > { %s279_s23 = scalar_lea.vmem %s630_s4, %s465_s11 }
  0x23   : > { %vm329_vm1 = vcmp.lt.s32.totalorder %v325_v11, %v328_v12 }
  0x24   : > { %316 = vmatpush.bf16.msra.mxu0 %v485_v7 }
  0x28   : > { %317 = vmatpush.bf16.msra.mxu0 %v484_v8 }
  0x2b   : > { %480 = vmatmul.msk.bf16.vlgmr.msra.gmra.mxu0 %vm306_vm0, %v281_v9 }
  0xa8   : > { %v319_v13 = vpop.f32.mrf.mxu0 }
  0xa9   : > { %323 = vst [vmem:[%s271_s14] sm:$0xff] %v319_v13  ;;  %v330_v14 = vsel %vm329_vm1, %v319_v13, 0.0 }
  0xaa   : > { %331 = vadd.xlane.f32.xlu0 %v330_v14  ;;  %v333_v16 = vmul.f32 %v330_v14, %v330_v14 }
  0xb0   : > { %v321_v15 = vpop.f32.mrf.mxu0 }
  0xb2   : > { %334 = vadd.xlane.f32.xlu0 %v333_v16 }
 0x11d   : > { %v332_v17 = vpop.xlane.xlu0 %331 }
 0x11e   : > { %336 = vst [vmem:[%s275_s20] sm:$0xff] %v332_v17 }
 0x125   : > { %v335_v18 = vpop.xlane.xlu0 %334 }
 0x126   : > { %337 = vst [vmem:[%s279_s23] sm:$0xff] %v335_v18 }
 0x127 PF: > { %p12_p9 = scmp.ge.s32.totalorder %s581_s19, 6   ;;  %s631_s15 = smov %s531_s16 }
 0x128   : > { %s632_s16 = smov %s590_s22  ;;  %s633_s17 = smov %s581_s19 }
 0x129   :  { %14 = sbr.rel (!%p12_p9) target bundleno = 2 (0x2), region = 128 }

</bundles_post_ra>
